<compile_context>
chip_gen: v7x
topology: tpu7x:2x2x1
jax: 0.10.0
libtpu: 0.0.40
codegen_flags: <defaults>
</compile_context>

<pallas_src>
import functools

import jax
import jax.numpy as jnp
from jax.experimental import pallas as pl
from jax.experimental.pallas import tpu as pltpu


ACT_DTYPE = jnp.bfloat16      # activation storage dtype (halves HBM traffic)
_MAX_TAP_ROWS = 4096          # target output rows per tap-conv grid block


def _round_up(x, m):
    return (x + m - 1) // m * m


def _choose_tn(Np, other_programs):
    """Pick the N tile: 256-wide (v6e/v7x MXU width) whenever that still
    leaves >= 2 program instances for megacore, else 128."""
    if Np % 256 == 0 and (Np >= 512 or other_programs >= 2):
        return 256
    return 128


# ----------------------------------------------------------------------------
# Pallas kernels
# ----------------------------------------------------------------------------

def _mm_bias_relu_kernel(a_ref, w_ref, b_ref, o_ref):
    # a: (TM, K) bf16, w: (K, TN) BN-folded bf16, b: (1, TN) f32.
    acc = jnp.dot(a_ref[...], w_ref[...], preferred_element_type=jnp.float32)
    o_ref[...] = jnp.maximum(acc + b_ref[...], 0.0).astype(o_ref.dtype)


def matmul_bias_relu(a, w, bias2d):
    """ReLU(a @ w + b): a (M,K) bf16, w (K,Np) bf16, b (1,Np) f32 -> (M,Np) bf16."""
    M, K = a.shape
    Kw, Np = w.shape
    assert Kw == K and Np % 128 == 0
    # Adaptive M tiling: single tile rounded to 8 sublanes for the many small
    # layers, 256-row tiles for the big stem layers.
    Mp8 = _round_up(M, 8)
    if Mp8 <= 1024:
        TM, Mp = Mp8, Mp8
    else:
        TM, Mp = 256, _round_up(M, 256)
    TN = _choose_tn(Np, Mp // TM)
    if Mp != M:
        a = jnp.pad(a, ((0, Mp - M), (0, 0)))
    cost = pl.CostEstimate(
        flops=2 * Mp * K * Np,
        transcendentals=0,
        bytes_accessed=Mp * K * 2 + K * Np * 2 + Mp * Np * 2 + 4 * Np)
    out = pl.pallas_call(
        _mm_bias_relu_kernel,
        out_shape=jax.ShapeDtypeStruct((Mp, Np), ACT_DTYPE),
        grid=(Mp // TM, Np // TN),
        in_specs=[
            pl.BlockSpec((TM, K), lambda i, j: (i, 0)),
            pl.BlockSpec((K, TN), lambda i, j: (0, j)),
            pl.BlockSpec((1, TN), lambda i, j: (0, j)),
        ],
        out_specs=pl.BlockSpec((TM, TN), lambda i, j: (i, j)),
        compiler_params=pltpu.CompilerParams(
            dimension_semantics=("parallel", "parallel")),
        cost_estimate=cost,
    )(a, w, bias2d)
    return out[:M] if Mp != M else out


def _tap_conv_kernel(kh, Wo, TH, a_ref, w_ref, b_ref, o_ref):
    # a: (1, THp*Wo, kw*C) bf16 width-im2col rows, w: (kh, kw*C, TN) bf16,
    # b: (1, TN) f32, o: (1, TH*Wo, TN) bf16.  kh row taps are accumulated in
    # f32 inside the kernel (no kh x HBM blow-up).
    M = TH * Wo
    a = a_ref[0]
    acc = None
    for di in range(kh):
        a_tap = a if kh == 1 else a[di * Wo: di * Wo + M, :]
        part = jnp.dot(a_tap, w_ref[di], preferred_element_type=jnp.float32)
        acc = part if acc is None else acc + part
    o_ref[0] = jnp.maximum(acc + b_ref[...], 0.0).astype(o_ref.dtype)


def conv_tap_s1(x, w2, bias2d, kh, kw, pad):
    """Stride-1 kh x kw conv + folded-BN + ReLU: kw width windows on the host,
    in-kernel kh-tap accumulation on the MXU.  Returns (y, Ho, Wo) with y of
    shape (B, Ho, Wo, Np) bf16."""
    B, H, W, C = x.shape
    K, Np = w2.shape
    assert K == kh * kw * C
    ph, pw = pad
    if ph or pw:
        x = jnp.pad(x, ((0, 0), (ph, ph), (pw, pw), (0, 0)))
    Hp, Wp = x.shape[1], x.shape[2]
    Ho, Wo = Hp - kh + 1, Wp - kw + 1

    # Chunk output rows so each grid block stays a few MiB in VMEM (matters for
    # 299x299 stem maps; at small sizes nchunk == 1 and TH == Ho).
    TH = max(1, min(Ho, _MAX_TAP_ROWS // max(Wo, 1)))
    nchunk = pl.cdiv(Ho, TH)
    TH = pl.cdiv(Ho, nchunk)
    THp = TH + kh - 1
    Hp_need = nchunk * TH + kh - 1
    if Hp_need > Hp:
        x = jnp.pad(x, ((0, 0), (0, Hp_need - Hp), (0, 0), (0, 0)))

    # kw width windows (kw x input HBM traffic, not kh*kw x), chunked over H.
    cols = []
    for dj in range(kw):
        chunks = [jax.lax.slice(
            x, (0, c * TH, dj, 0), (B, c * TH + THp, dj + Wo, C))
            for c in range(nchunk)]
        col = chunks[0][:, None] if nchunk == 1 else jnp.stack(chunks, axis=1)
        cols.append(col)
    a = jnp.concatenate(cols, axis=-1) if kw > 1 else cols[0]
    a = a.reshape(B * nchunk, THp * Wo, kw * C)          # bf16

    w3 = w2.reshape(kh, kw * C, Np)
    TN = _choose_tn(Np, B * nchunk)
    rows = B * nchunk * TH * Wo
    cost = pl.CostEstimate(
        flops=2 * rows * K * Np,
        transcendentals=0,
        bytes_accessed=int(a.size) * 2 + K * Np * 2 + rows * Np * 2 + 4 * Np)
    y = pl.pallas_call(
        functools.partial(_tap_conv_kernel, kh, Wo, TH),
        out_shape=jax.ShapeDtypeStruct((B * nchunk, TH * Wo, Np), ACT_DTYPE),
        grid=(B * nchunk, Np // TN),
        in_specs=[
            pl.BlockSpec((1, THp * Wo, kw * C), lambda i, j: (i, 0, 0)),
            pl.BlockSpec((kh, kw * C, TN), lambda i, j: (0, 0, j)),
            pl.BlockSpec((1, TN), lambda i, j: (0, j)),
        ],
        out_specs=pl.BlockSpec((1, TH * Wo, TN), lambda i, j: (i, 0, j)),
        compiler_params=pltpu.CompilerParams(
            dimension_semantics=("parallel", "parallel")),
        cost_estimate=cost,
    )(a, w3, bias2d)
    y = y.reshape(B, nchunk * TH, Wo, Np)
    if nchunk * TH != Ho:
        y = y[:, :Ho]
    return y, Ho, Wo


def _global_max_kernel(x_ref, o_ref):
    # x block: (1, H*W, C) -> AdaptiveMaxPool2d(1); C stays in the lanes.
    o_ref[0] = jnp.max(x_ref[0], axis=0, keepdims=True).astype(o_ref.dtype)


def _global_avg_kernel(inv_hw, x_ref, o_ref):
    s = jnp.sum(x_ref[0].astype(jnp.float32), axis=0, keepdims=True)
    o_ref[0] = (s * inv_hw).astype(o_ref.dtype)


# ----------------------------------------------------------------------------
# Layer helpers (JAX glue around the Pallas kernels)
# ----------------------------------------------------------------------------

def _conv_group(P, name, x, stride=1, pad=(0, 0)):
    """BasicConv2d (or a fused group of 1x1 BasicConv2d sharing one input):
    Conv2d(no bias) + BN(eval, folded) + ReLU, NHWC, bf16 activations."""
    w2, bias, kh, kw, splits = P[name]
    B, H, W, C = x.shape
    if kh == 1 and kw == 1 and stride == 1:
        y = matmul_bias_relu(x.reshape(B * H * W, C), w2, bias)
        y = y.reshape(B, H, W, -1)
    elif stride == 1:
        y, _, _ = conv_tap_s1(x, w2, bias, kh, kw, pad)
    else:
        # stride-2 reduction convs (5 total): classic im2col + tiled matmul.
        ph, pw = pad
        if ph or pw:
            x = jnp.pad(x, ((0, 0), (ph, ph), (pw, pw), (0, 0)))
        Hp, Wp = x.shape[1], x.shape[2]
        Ho = (Hp - kh) // stride + 1
        Wo = (Wp - kw) // stride + 1
        cols = []
        for di in range(kh):
            for dj in range(kw):
                cols.append(jax.lax.slice(
                    x, (0, di, dj, 0),
                    (B, di + stride * (Ho - 1) + 1, dj + stride * (Wo - 1) + 1, C),
                    (1, stride, stride, 1)))
        a = jnp.concatenate(cols, axis=-1).reshape(B * Ho * Wo, kh * kw * C)
        y = matmul_bias_relu(a, w2, bias).reshape(B, Ho, Wo, -1)
    outs, off = [], 0
    for n in splits:
        outs.append(y[..., off:off + n])
        off += n
    return outs


def conv_bn_relu(P, name, x, stride=1, pad=(0, 0)):
    return _conv_group(P, name, x, stride, pad)[0]


def conv1x1_multi(P, name, x):
    """Fused group of same-input 1x1 BasicConv2d branches (one wide matmul)."""
    return _conv_group(P, name, x)


def pool2d(x, ksize, stride, pad, op):
    """MaxPool2d(k, s) / AvgPool2d(k, s, pad, count_include_pad=True), NHWC.
    Host builds k column windows split into `stride` row phases (~k x traffic),
    the k^2-tap reduction runs per-batch-block in a tiled Pallas kernel."""
    B, H, W, C = x.shape
    if pad:
        fill = float('-inf') if op == 'max' else 0.0
        x = jnp.pad(x, ((0, 0), (pad, pad), (pad, pad), (0, 0)),
                    constant_values=fill)
    Hp, Wp = x.shape[1], x.shape[2]
    Ho = (Hp - ksize) // stride + 1
    Wo = (Wp - ksize) // stride + 1

    wins = []
    for dj in range(ksize):
        col = jax.lax.slice(
            x, (0, 0, dj, 0),
            (B, Hp, dj + stride * (Wo - 1) + 1, C),
            (1, 1, stride, 1))
        for hp in range(stride):
            wins.append(col[:, hp::stride])

    def kernel(*refs):
        o_ref = refs[-1]
        srcs = [r[0] for r in refs[:-1]]
        acc = None
        for di in range(ksize):
            for dj in range(ksize):
                src = srcs[dj * stride + (di % stride)]
                lo = di // stride
                v = src[lo:lo + Ho, :, :]
                if op == 'avg':
                    v = v.astype(jnp.float32)
                if acc is None:
                    acc = v
                elif op == 'max':
                    acc = jnp.maximum(acc, v)
                else:
                    acc = acc + v
        if op == 'avg':
            # PyTorch AvgPool2d(count_include_pad=True): always divide by k*k
            acc = acc * (1.0 / (ksize * ksize))
        o_ref[0] = acc.astype(o_ref.dtype)

    in_specs = [pl.BlockSpec((1,) + w.shape[1:], lambda b: (b, 0, 0, 0))
                for w in wins]
    return pl.pallas_call(
        kernel,
        out_shape=jax.ShapeDtypeStruct((B, Ho, Wo, C), x.dtype),
        grid=(B,),
        in_specs=in_specs,
        out_specs=pl.BlockSpec((1, Ho, Wo, C), lambda b: (b, 0, 0, 0)),
        compiler_params=pltpu.CompilerParams(dimension_semantics=("parallel",)),
    )(*wins)


def global_pool(x, op):
    """AdaptiveMaxPool2d(1)/AdaptiveAvgPool2d(1): NHWC -> (B, C) float32."""
    B, H, W, C = x.shape
    xr = x.reshape(B, H * W, C)              # free reshape; C stays in lanes
    kernel = (_global_max_kernel if op == 'max'
              else functools.partial(_global_avg_kernel, 1.0 / (H * W)))
    out = pl.pallas_call(
        kernel,
        out_shape=jax.ShapeDtypeStruct((B, 1, C), jnp.float32),
        grid=(B,),
        in_specs=[pl.BlockSpec((1, H * W, C), lambda b: (b, 0, 0))],
        out_specs=pl.BlockSpec((1, 1, C), lambda b: (b, 0, 0)),
        compiler_params=pltpu.CompilerParams(dimension_semantics=("parallel",)),
    )(xr)
    return out.reshape(B, C)


# ----------------------------------------------------------------------------
# Deterministic parameter construction (shapes from torchvision Inception3)
# ----------------------------------------------------------------------------

def _add(defs, name, cin, cout, k):
    kh, kw = (k, k) if isinstance(k, int) else k
    defs.append((name, cin, cout, kh, kw))


def _conv_defs():
    d = []
    # stem
    _add(d, 'Conv2d_1a_3x3', 3, 32, 3)
    _add(d, 'Conv2d_2a_3x3', 32, 32, 3)
    _add(d, 'Conv2d_2b_3x3', 32, 64, 3)
    _add(d, 'Conv2d_3b_1x1', 64, 80, 1)
    _add(d, 'Conv2d_4a_3x3', 80, 192, 3)

    def add_a(p, cin, pf):
        _add(d, p + '.branch1x1', cin, 64, 1)
        _add(d, p + '.branch5x5_1', cin, 48, 1)
        _add(d, p + '.branch5x5_2', 48, 64, 5)
        _add(d, p + '.branch3x3dbl_1', cin, 64, 1)
        _add(d, p + '.branch3x3dbl_2', 64, 96, 3)
        _add(d, p + '.branch3x3dbl_3', 96, 96, 3)
        _add(d, p + '.branch_pool', cin, pf, 1)

    def add_b(p, cin):
        _add(d, p + '.branch3x3', cin, 384, 3)
        _add(d, p + '.branch3x3dbl_1', cin, 64, 1)
        _add(d, p + '.branch3x3dbl_2', 64, 96, 3)
        _add(d, p + '.branch3x3dbl_3', 96, 96, 3)

    def add_c(p, cin, c7):
        _add(d, p + '.branch1x1', cin, 192, 1)
        _add(d, p + '.branch7x7_1', cin, c7, 1)
        _add(d, p + '.branch7x7_2', c7, c7, (1, 7))
        _add(d, p + '.branch7x7_3', c7, 192, (7, 1))
        _add(d, p + '.branch7x7dbl_1', cin, c7, 1)
        _add(d, p + '.branch7x7dbl_2', c7, c7, (7, 1))
        _add(d, p + '.branch7x7dbl_3', c7, c7, (1, 7))
        _add(d, p + '.branch7x7dbl_4', c7, c7, (7, 1))
        _add(d, p + '.branch7x7dbl_5', c7, 192, (1, 7))
        _add(d, p + '.branch_pool', cin, 192, 1)

    def add_d(p, cin):
        _add(d, p + '.branch3x3_1', cin, 192, 1)
        _add(d, p + '.branch3x3_2', 192, 320, 3)
        _add(d, p + '.branch7x7x3_1', cin, 192, 1)
        _add(d, p + '.branch7x7x3_2', 192, 192, (1, 7))
        _add(d, p + '.branch7x7x3_3', 192, 192, (7, 1))
        _add(d, p + '.branch7x7x3_4', 192, 192, 3)

    def add_e(p, cin):
        _add(d, p + '.branch1x1', cin, 320, 1)
        _add(d, p + '.branch3x3_1', cin, 384, 1)
        _add(d, p + '.branch3x3_2a', 384, 384, (1, 3))
        _add(d, p + '.branch3x3_2b', 384, 384, (3, 1))
        _add(d, p + '.branch3x3dbl_1', cin, 448, 1)
        _add(d, p + '.branch3x3dbl_2', 448, 384, 3)
        _add(d, p + '.branch3x3dbl_3a', 384, 384, (1, 3))
        _add(d, p + '.branch3x3dbl_3b', 384, 384, (3, 1))
        _add(d, p + '.branch_pool', cin, 192, 1)

    add_a('Mixed_5b', 192, 32)
    add_a('Mixed_5c', 256, 64)
    add_a('Mixed_5d', 288, 64)
    add_b('Mixed_6a', 288)
    add_c('Mixed_6b', 768, 128)
    add_c('Mixed_6c', 768, 160)
    add_c('Mixed_6d', 768, 160)
    add_c('Mixed_6e', 768, 192)
    add_d('Mixed_7a', 768)
    add_e('Mixed_7b', 1280)
    add_e('Mixed_7c', 2048)
    return d


def _fused_heads():
    """Groups of same-input 1x1 branches fused into one wide matmul."""
    heads = []
    for p in ('Mixed_5b', 'Mixed_5c', 'Mixed_5d'):
        heads.append((p + '.head1x1',
                      [p + '.branch1x1', p + '.branch5x5_1', p + '.branch3x3dbl_1']))
    for p in ('Mixed_6b', 'Mixed_6c', 'Mixed_6d', 'Mixed_6e'):
        heads.append((p + '.head1x1',
                      [p + '.branch1x1', p + '.branch7x7_1', p + '.branch7x7dbl_1']))
    heads.append(('Mixed_7a.head1x1',
                  ['Mixed_7a.branch3x3_1', 'Mixed_7a.branch7x7x3_1']))
    for p in ('Mixed_7b', 'Mixed_7c'):
        heads.append((p + '.head1x1',
                      [p + '.branch1x1', p + '.branch3x3_1', p + '.branch3x3dbl_1']))
    return heads


def _pack_entry(w2, bias, kh, kw, splits):
    """Lane-pad (to 128, or 256 for wide layers so TN=256 can always be used)
    and pack the weight as bf16 (the MXU operand dtype)."""
    K, N = w2.shape
    Np = _round_up(N, 128)
    if Np >= 512:
        Np = _round_up(N, 256)
    w_p = jnp.pad(w2, ((0, 0), (0, Np - N))).astype(jnp.bfloat16)
    b_p = jnp.pad(bias, (0, Np - N)).reshape(1, Np).astype(jnp.float32)
    return (w_p, b_p, kh, kw, tuple(splits))


def build_params(key):
    """Deterministic synthetic weights; BN (eval) folded into conv weight/bias,
    lane-padded and bf16-packed once here (not per forward pass)."""
    raw = {}
    for idx, (name, cin, cout, kh, kw) in enumerate(_conv_defs()):
        k = jax.random.fold_in(key, idx)
        kconv, kg, kb, km, kv = jax.random.split(k, 5)
        w = jax.random.normal(kconv, (cout, cin, kh, kw), jnp.float32)
        w = w * (1.0 / jnp.sqrt(float(cin * kh * kw)))
        gamma = 1.0 + 0.1 * jax.random.normal(kg, (cout,), jnp.float32)
        beta = 0.1 * jax.random.normal(kb, (cout,), jnp.float32)
        mean = 0.1 * jax.random.normal(km, (cout,), jnp.float32)
        var = 0.5 + 0.5 * jax.random.uniform(kv, (cout,), jnp.float32)
        scale = gamma / jnp.sqrt(var + 1e-3)        # BasicConv2d BN eps = 0.001
        # (O, I, kh, kw) -> (kh*kw*I, O), then fold BN scale/shift
        w2 = jnp.transpose(w, (2, 3, 1, 0)).reshape(kh * kw * cin, cout)
        w2 = w2 * scale[None, :]
        bias = beta - mean * scale
        raw[name] = (w2, bias, kh, kw, cout)

    params = {}
    fused_members = set()
    for head, members in _fused_heads():
        ws = [raw[m][0] for m in members]
        bs = [raw[m][1] for m in members]
        splits = [raw[m][4] for m in members]
        params[head] = _pack_entry(jnp.concatenate(ws, axis=1),
                                   jnp.concatenate(bs, axis=0), 1, 1, splits)
        fused_members.update(members)
    for name, (w2, bias, kh, kw, n) in raw.items():
        if name not in fused_members:
            params[name] = _pack_entry(w2, bias, kh, kw, [n])
    return params


# ----------------------------------------------------------------------------
# Inception blocks (torchvision forward semantics, NHWC concat on channel axis)
# ----------------------------------------------------------------------------

def inception_a(P, p, x):
    b1, b5, b3 = conv1x1_multi(P, p + '.head1x1', x)
    b5 = conv_bn_relu(P, p + '.branch5x5_2', b5, pad=(2, 2))
    b3 = conv_bn_relu(P, p + '.branch3x3dbl_2', b3, pad=(1, 1))
    b3 = conv_bn_relu(P, p + '.branch3x3dbl_3', b3, pad=(1, 1))
    bp = pool2d(x, 3, 1, 1, 'avg')
    bp = conv_bn_relu(P, p + '.branch_pool', bp)
    return jnp.concatenate([b1, b5, b3, bp], axis=-1)


def inception_b(P, p, x):
    b3 = conv_bn_relu(P, p + '.branch3x3', x, stride=2)
    bd = conv_bn_relu(P, p + '.branch3x3dbl_1', x)
    bd = conv_bn_relu(P, p + '.branch3x3dbl_2', bd, pad=(1, 1))
    bd = conv_bn_relu(P, p + '.branch3x3dbl_3', bd, stride=2)
    bp = pool2d(x, 3, 2, 0, 'max')
    return jnp.concatenate([b3, bd, bp], axis=-1)


def inception_c(P, p, x):
    b1, b7, bd = conv1x1_multi(P, p + '.head1x1', x)
    b7 = conv_bn_relu(P, p + '.branch7x7_2', b7, pad=(0, 3))
    b7 = conv_bn_relu(P, p + '.branch7x7_3', b7, pad=(3, 0))
    bd = conv_bn_relu(P, p + '.branch7x7dbl_2', bd, pad=(3, 0))
    bd = conv_bn_relu(P, p + '.branch7x7dbl_3', bd, pad=(0, 3))
    bd = conv_bn_relu(P, p + '.branch7x7dbl_4', bd, pad=(3, 0))
    bd = conv_bn_relu(P, p + '.branch7x7dbl_5', bd, pad=(0, 3))
    bp = pool2d(x, 3, 1, 1, 'avg')
    bp = conv_bn_relu(P, p + '.branch_pool', bp)
    return jnp.concatenate([b1, b7, bd, bp], axis=-1)


def inception_d(P, p, x):
    b3, b7 = conv1x1_multi(P, p + '.head1x1', x)
    b3 = conv_bn_relu(P, p + '.branch3x3_2', b3, stride=2)
    b7 = conv_bn_relu(P, p + '.branch7x7x3_2', b7, pad=(0, 3))
    b7 = conv_bn_relu(P, p + '.branch7x7x3_3', b7, pad=(3, 0))
    b7 = conv_bn_relu(P, p + '.branch7x7x3_4', b7, stride=2)
    bp = pool2d(x, 3, 2, 0, 'max')
    return jnp.concatenate([b3, b7, bp], axis=-1)


def inception_e(P, p, x):
    b1, y, z = conv1x1_multi(P, p + '.head1x1', x)
    b3 = jnp.concatenate([
        conv_bn_relu(P, p + '.branch3x3_2a', y, pad=(0, 1)),
        conv_bn_relu(P, p + '.branch3x3_2b', y, pad=(1, 0)),
    ], axis=-1)
    z = conv_bn_relu(P, p + '.branch3x3dbl_2', z, pad=(1, 1))
    bd = jnp.concatenate([
        conv_bn_relu(P, p + '.branch3x3dbl_3a', z, pad=(0, 1)),
        conv_bn_relu(P, p + '.branch3x3dbl_3b', z, pad=(1, 0)),
    ], axis=-1)
    bp = pool2d(x, 3, 1, 1, 'avg')
    bp = conv_bn_relu(P, p + '.branch_pool', bp)
    return jnp.concatenate([b1, b3, bd, bp], axis=-1)


def build_backbone(P):
    """(name, fn) pairs, same order as backbone.named_children() sans AuxLogits/fc."""
    return [
        ('Conv2d_1a_3x3', lambda x: conv_bn_relu(P, 'Conv2d_1a_3x3', x, stride=2)),
        ('Conv2d_2a_3x3', lambda x: conv_bn_relu(P, 'Conv2d_2a_3x3', x)),
        ('Conv2d_2b_3x3', lambda x: conv_bn_relu(P, 'Conv2d_2b_3x3', x, pad=(1, 1))),
        ('maxpool1', lambda x: pool2d(x, 3, 2, 0, 'max')),
        ('Conv2d_3b_1x1', lambda x: conv_bn_relu(P, 'Conv2d_3b_1x1', x)),
        ('Conv2d_4a_3x3', lambda x: conv_bn_relu(P, 'Conv2d_4a_3x3', x)),
        ('maxpool2', lambda x: pool2d(x, 3, 2, 0, 'max')),
        ('Mixed_5b', lambda x: inception_a(P, 'Mixed_5b', x)),
        ('Mixed_5c', lambda x: inception_a(P, 'Mixed_5c', x)),
        ('Mixed_5d', lambda x: inception_a(P, 'Mixed_5d', x)),
        ('Mixed_6a', lambda x: inception_b(P, 'Mixed_6a', x)),
        ('Mixed_6b', lambda x: inception_c(P, 'Mixed_6b', x)),
        ('Mixed_6c', lambda x: inception_c(P, 'Mixed_6c', x)),
        ('Mixed_6d', lambda x: inception_c(P, 'Mixed_6d', x)),
        ('Mixed_6e', lambda x: inception_c(P, 'Mixed_6e', x)),
        ('Mixed_7a', lambda x: inception_d(P, 'Mixed_7a', x)),
        ('Mixed_7b', lambda x: inception_e(P, 'Mixed_7b', x)),
        ('Mixed_7c', lambda x: inception_e(P, 'Mixed_7c', x)),
        ('avgpool', lambda x: global_pool(x, 'avg').reshape(x.shape[0], 1, 1, -1)),
        ('dropout', lambda x: x),   # eval-mode Dropout == identity
    ]


def inception_v3_forward(P, x_nchw, every_layer=True):
    """Matches InceptionV3_Network.forward: dict of {module_name: (B, C) features}."""
    x = jnp.transpose(x_nchw, (0, 2, 3, 1)).astype(ACT_DTYPE)   # NCHW -> NHWC bf16
    B = x.shape[0]
    feature_list = {}
    for name, fn in build_backbone(P):
        x = fn(x)
        if every_layer:
            # pool_method = nn.AdaptiveMaxPool2d(1); .view(batch_size, -1)
            feature_list[name] = global_pool(x, 'max').reshape(B, -1)
    if not feature_list:
        feature_list['pre_logits'] = global_pool(x, 'max').reshape(B, -1)
    return feature_list


if __name__ == "__main__":
    key = jax.random.PRNGKey(0)
    pkey, xkey = jax.random.split(key)
    params = build_params(pkey)

    # NCHW input like PyTorch; 75x75 is the minimum spatial size the full
    # InceptionV3 stage stack supports (final Mixed_7c map is 1x1).
    x = jax.random.normal(xkey, (2, 3, 75, 75), jnp.float32)

    feats = inception_v3_forward(params, x, every_layer=True)
    feats = jax.block_until_ready(feats)

    # sanity: expected per-stage channel widths
    assert feats['Conv2d_1a_3x3'].shape == (2, 32)
    assert feats['maxpool2'].shape == (2, 192)
    assert feats['Mixed_5b'].shape == (2, 256)
    assert feats['Mixed_6e'].shape == (2, 768)
    assert feats['Mixed_7a'].shape == (2, 1280)
    assert feats['Mixed_7c'].shape == (2, 2048)
    assert feats['avgpool'].shape == (2, 2048)
    assert feats['dropout'].shape == (2, 2048)
    print("KERNEL_OK")
</pallas_src>

<mosaic_0001>
module attributes {stable_mosaic.version = 11 : i64} {
  func.func @_mm_bias_relu_kernel(%arg0: i32, %arg1: i32, %arg2: memref<256x27xbf16, #tpu.memory_space<vmem>>, %arg3: memref<27x128xbf16, #tpu.memory_space<vmem>>, %arg4: memref<1x128xf32, #tpu.memory_space<vmem>>, %arg5: memref<256x128xbf16, #tpu.memory_space<vmem>>) attributes {dimension_semantics = [#tpu.dimension_semantics<parallel>, #tpu.dimension_semantics<parallel>], iteration_bounds = array<i64: 11, 1>, scalar_prefetch = 0 : i64, scratch_operands = 0 : i64, tpu.core_type = #tpu.core_type<tc>, window_params = [{transform_indices = @transform_0, window_bounds = array<i64: 256, 27>}, {transform_indices = @transform_1, window_bounds = array<i64: 27, 128>}, {transform_indices = @transform_2, window_bounds = array<i64: 1, 128>}, {transform_indices = @transform_3, window_bounds = array<i64: 256, 128>}]} {
    %c0 = arith.constant 0 : index
    %c0_0 = arith.constant 0 : index
    %0 = vector.load %arg2[%c0, %c0_0] : memref<256x27xbf16, #tpu.memory_space<vmem>>, vector<256x27xbf16>
    %c0_1 = arith.constant 0 : index
    %c0_2 = arith.constant 0 : index
    %1 = vector.load %arg3[%c0_1, %c0_2] : memref<27x128xbf16, #tpu.memory_space<vmem>>, vector<27x128xbf16>
    %cst = arith.constant dense<0.000000e+00> : vector<256x128xf32>
    %2 = tpu.matmul %0, %1, %cst {dimension_numbers = #tpu.dot_dimension_numbers<[1], [0], [0], [1], [0, 0, 1, 1], [], []>} : vector<256x27xbf16>, vector<27x128xbf16>, vector<256x128xf32> -> vector<256x128xf32>
    %c0_3 = arith.constant 0 : index
    %c0_4 = arith.constant 0 : index
    %3 = vector.load %arg4[%c0_3, %c0_4] : memref<1x128xf32, #tpu.memory_space<vmem>>, vector<1x128xf32>
    %4 = vector.broadcast %3 : vector<1x128xf32> to vector<256x128xf32>
    %5 = arith.addf %2, %4 : vector<256x128xf32>
    %cst_5 = arith.constant 0.000000e+00 : f32
    %6 = vector.broadcast %cst_5 : f32 to vector<256x128xf32>
    %7 = arith.maximumf %5, %6 : vector<256x128xf32>
    %8 = arith.truncf %7 : vector<256x128xf32> to vector<256x128xbf16>
    %c0_6 = arith.constant 0 : index
    %c0_7 = arith.constant 0 : index
    %9 = vector.load %arg5[%c0_6, %c0_7] : memref<256x128xbf16, #tpu.memory_space<vmem>>, vector<256x128xbf16>
    tpu.vector_store %arg5[%c0_6, %c0_7], %8 {strides = array<i32>} : memref<256x128xbf16, #tpu.memory_space<vmem>>, vector<256x128xbf16>,
    return
  }
  func.func @transform_0(%arg0: i32, %arg1: i32) -> (i32, i32) {
    %c0_i32 = arith.constant 0 : i32
    %c0_i32_0 = arith.constant 0 : i32
    return %arg0, %c0_i32 : i32, i32
  }
  func.func @transform_1(%arg0: i32, %arg1: i32) -> (i32, i32) {
    %c0_i32 = arith.constant 0 : i32
    %c0_i32_0 = arith.constant 0 : i32
    return %c0_i32, %arg1 : i32, i32
  }
  func.func @transform_2(%arg0: i32, %arg1: i32) -> (i32, i32) {
    %c0_i32 = arith.constant 0 : i32
    %c0_i32_0 = arith.constant 0 : i32
    return %c0_i32, %arg1 : i32, i32
  }
  func.func @transform_3(%arg0: i32, %arg1: i32) -> (i32, i32) {
    %c0_i32 = arith.constant 0 : i32
    return %arg0, %arg1 : i32, i32
  }
}

</mosaic_0001>

<bundles_post_ra>
// kernel: tpu_custom_call.1
= control target key start
LH: loop header
LB: loop body
LE: loop exit
PB: predicated region body
PF: predicated region fallthrough
CT: control target
= control target key end

     0   :  { %8 = vsyncpa [#allocation3], 0  ;;  %s1537_s0 = inlined_call_operand.vmem [shape: bf16[2816,27], index: 0, kind: input, shape index: {}]   ;;  %s1538_s1 = inlined_call_operand.vmem [shape: bf16[27,128], index: 1, kind: input, shape index: {}]   ;;  %s1539_s2 = inlined_call_operand.vmem [shape: f32[1,128], index: 2, kind: input, shape index: {}]   ;;  %s1540_s3 = inlined_call_operand.hbm [shape: bf16[2816,128], index: 3, kind: output, shape index: {}]  }
   0x1   :  { %10 = vsyncpa [#allocation3 + $0x1], 0  ;;  %s1323_s12 = smov 0   ;;  %s1325_s13 = smov 0  }
   0x2   :  { %s1327_s14 = smov 0   ;;  %s1329_s15 = smov 0  }
   0x3   :  { %s1331_s16 = smov 0   ;;  %s1333_s17 = smov 0  }
   0x4 LB: > { %s875_s18 = sadd.s32 4294967295, %s1297_s17   ;;  %s876_s19 = sadd.s32 4294967294, %s1297_s17   ;;  %s1297_s17 = sphi %s1333_s17, %s16_s17   ;;  %s1293_s16 = sphi %s1331_s16, %s1547_s16   ;;  %s1289_s15 = sphi %s1329_s15, %s1546_s15   ;;  %s1285_s14 = sphi %s1327_s14, %s1545_s14   ;;  %s1281_s13 = sphi %s1325_s13, %s1544_s13   ;;  %s1277_s12 = sphi %s1323_s12, %s1543_s12  }
   0x5   : > { %s28_s20 = sadd.s32 1, %s1293_s16  ;;  %s115_s21 = sadd.s32 1, %s1285_s14 }
   0x6   : > { %p30_p0 = scmp.ge.s32.totalorder %s28_s20, 11  ;;  %p125_p1 = scmp.ne.s32.totalorder %s1285_s14, %s1281_s13 }
   0x7   : > { %p126_p2 = scmp.eq.s32.totalorder %s875_s18, 10  ;;  %p131_p3 = scmp.ne.s32.totalorder %s1281_s13, %s1277_s12 }
   0x8   : > { %s1549_s20 = smov (%p30_p0, %s28_s20), 0  ;;  %p132_p5 = scmp.eq.s32.totalorder %s876_s19, 10 }
   0x9   : > { %p1363_p4 = por %p126_p2, %p125_p1  ;;  %s110_s23 = ssub.s32 %s1293_s16, %s1549_s20 }
   0xa   : > { %p881_p6 = scmp.ge.s32.totalorder %s1297_s17, 1  ;;  %p113_p7 = scmp.eq.s32.totalorder %s110_s23, 0 }
   0xb   : > { %p1370_p8 = por %p132_p5, %p131_p3  ;;  %p172_p9 = scmp.lt.s32.totalorder %s1297_s17, 12 }
   0xc   : > { %s1376_s25 = scalar_select %p113_p7, %s1285_s14, %s115_s21  }
   0xd   : > { %p173_p10 = pnand %p881_p6, %p172_p9 }
   0xe   : > { %v1201_v0 = vld [vmem:[%s1538_s1] sm:$0xff] (!%p173_p10)   ;;  %vm401_vm0 = vcmask (!%p173_p10), 1044480   ;;  %v1202_v1 = vld [vmem:[%s1538_s1 + $0x8] sm:$0x3f] (!%p173_p10)   ;;  %vm402_vm1 = vcmask (!%p173_p10), 1045504   ;;  %s883_s30 = sshll.u32 (!%p173_p10), %s1289_s15, 5 }
   0xf   : > { %176 = sbr.rel (%p173_p10) target bundleno = 288 (0x120), region = 32  ;;  %1103 = vmatprep.subr.bf16.mxu0 (!%p173_p10), %v1201_v0  ;;  %1139 = vmatprep.subr.bf16.mxu1 (!%p173_p10), %v1201_v0  ;;  %v1299_v2 = vmov (!%p173_p10), 65535   ;;  %p204_p11 = scmp.lt.s32.totalorder (!%p173_p10), %s883_s30, 351  ;;  %vm352_vm2 = vcmask (!%p173_p10), 220160   ;;  %v1425_v22 = vld [vmem:[%s1539_s2] ss:$0 sm:$0xff] (!%p173_p10) }
  0x10   : > { %1104 = vmatpush3.bf16.msra.mxu0 (!%p173_p10), %v1201_v0  ;;  %1141 = vmatpush3.bf16.msra.mxu1 (!%p173_p10), %v1201_v0  ;;  %v403_v3 = vsel (!%p173_p10), %vm401_vm0, 4294967295, %v1299_v2  ;;  %s200_s10 = sand.u32 (!%p173_p10), 1, %s1281_s13   ;;  %s989_s19 = sshll.u32 (!%p173_p10), %s1289_s15, 11 }
  0x11   : > { %v404_v4 = vsel (!%p173_p10), %vm402_vm1, %v403_v3, 0  ;;  %s882_s11 = sshll.u32 (!%p173_p10), %s200_s10, 7  ;;  %s1481_s27 = scalar_lea.hbm (!%p173_p10), %s1540_s3, %s989_s19 }
  0x12   : > { %v406_v5 = vand.u32 (!%p173_p10), %v1202_v1, %v404_v4  ;;  %s1438_s18 = scalar_lea.vmem (!%p173_p10), [#allocation2], %s882_s11  ;;  %s1491_s15 = scalar_lea.sflag (!%p173_p10), [#allocation3], %s200_s10 }
  0x13   : > { %s776_s21 = sshll.u32 (!%p173_p10), %s1438_s18, 4  ;;  %s1300_s29 = smov (!%p173_p10), [#allocation2]   ;;  %s1483_s21 = int_to_ptr.vmem [resolvable:$true] %s776_s21 }
  0x14   : > { %1105 = vmatprep.subr.bf16.mxu0 (!%p173_p10), %v406_v5  ;;  %1140 = vmatprep.subr.bf16.mxu1 (!%p173_p10), %v406_v5  ;;  %s1219_s28 = scalar_lea.vmem (!%p173_p10), %s1483_s21, 2048 }
  0x15   : > { %1106 = vmatpush3.bf16.msra.mxu0 (!%p173_p10), %v406_v5  ;;  %1142 = vmatpush3.bf16.msra.mxu1 (!%p173_p10), %v406_v5  ;;  %p1220_p12 = scmp.ne.s32.totalorder (!%p173_p10), %s1483_s21, %s1219_s28 }
  0x16   : > { %s1551_s30 = smov (!%p204_p11, %s883_s30), 351 }
  0x17   : > { %s884_s4 = sshll.u32 %s1551_s30, 2  ;;  %p1221_p13 = pnand %p1220_p12, %p1363_p4 }
  0x18   : > { %s1388_s7 = scalar_lea.vmem %s1537_s0, %s884_s4  ;;  %s1223_s30 = sshll.u32 %s1300_s29, 4  ;;  %s1224_s30 = int_to_ptr.vmem [resolvable:$false] %s1223_s30 }
  0x19   : > { %v1203_v6 = vld [vmem:[%s1388_s7] sm:$0xff]   ;;  %v1205_v8 = vld [vmem:[%s1388_s7 + $0x8] sm:$0xff]   ;;  %v1207_v10 = vld [vmem:[%s1388_s7 + $0x10] sm:$0xff]   ;;  %p1222_p0 = pneg %p1221_p13  ;;  %s1225_s4 = scalar_lea.vmem %s1224_s30, 4096 }
  0x1a   : > { %v1204_v7 = vld [vmem:[%s1388_s7 + $0x40] sm:$0xff]   ;;  %1107 = vmatprep.mubr.msk.bf16.mxu0 %vm352_vm2, %v1203_v6  ;;  %v1206_v9 = vld [vmem:[%s1388_s7 + $0x48] sm:$0xff]   ;;  %v1208_v11 = vld [vmem:[%s1388_s7 + $0x50] sm:$0xff]   ;;  %p1226_p1 = scmp.lt.s32.totalorder %s1483_s21, %s1224_s30  ;;  %p1227_p2 = scmp.lt.s32.totalorder %s1225_s4, %s1219_s28 }
  0x1b   : > { %1123 = vmatprep.mubr.msk.bf16.mxu1 %vm352_vm2, %v1204_v7  ;;  %1108 = vmatmul.mubr.msk.bf16.vlgmr.msra.gmra.mrb[0].mxu0 %vm352_vm2, %v1205_v8  ;;  %v1209_v12 = vld [vmem:[%s1388_s7 + $0x18] sm:$0xff]   ;;  %v1211_v14 = vld [vmem:[%s1388_s7 + $0x20] sm:$0xff]   ;;  %v1213_v16 = vld [vmem:[%s1388_s7 + $0x28] sm:$0xff]  }
  0x1c   : > { %1124 = vmatmul.mubr.msk.bf16.vlgmr.msra.gmra.mrb[0].mxu1 %vm352_vm2, %v1206_v9  ;;  %1111 = vmatprep.mubr.msk.bf16.mxu0 %vm352_vm2, %v1207_v10  ;;  %v1210_v13 = vld [vmem:[%s1388_s7 + $0x58] sm:$0xff]   ;;  %v1212_v15 = vld [vmem:[%s1388_s7 + $0x60] sm:$0xff]   ;;  %v1214_v17 = vld [vmem:[%s1388_s7 + $0x68] sm:$0xff]   ;;  %p1228_p3 = por %p1227_p2, %p1226_p1 }
  0x1d   : > { %1127 = vmatprep.mubr.msk.bf16.mxu1 %vm352_vm2, %v1208_v11  ;;  %v1215_v18 = vld [vmem:[%s1388_s7 + $0x30] sm:$0xff]   ;;  %v1217_v20 = vld [vmem:[%s1388_s7 + $0x38] sm:$0xff]  }
  0x1e   : > { %v1216_v19 = vld [vmem:[%s1388_s7 + $0x70] sm:$0xff]   ;;  %v1218_v21 = vld [vmem:[%s1388_s7 + $0x78] sm:$0xff]   ;;  %p1229_p5 = pnand %p1228_p3, %p1222_p0 }
  0x23   : > { %1112 = vmatmul.mubr.msk.bf16.gmra.mrb[4].mxu0 %vm352_vm2, %v1209_v12 }
  0x24   : > { %1128 = vmatmul.mubr.msk.bf16.gmra.mrb[4].mxu1 %vm352_vm2, %v1210_v13  ;;  %1115 = vmatprep.mubr.msk.bf16.mxu0 %vm352_vm2, %v1211_v14 }
  0x25   : > { %1131 = vmatprep.mubr.msk.bf16.mxu1 %vm352_vm2, %v1212_v15 }
  0x2b   : > { %1116 = vmatmul.mubr.msk.bf16.gmra.mrb[8].mxu0 %vm352_vm2, %v1213_v16 }
  0x2c   : > { %1132 = vmatmul.mubr.msk.bf16.gmra.mrb[8].mxu1 %vm352_vm2, %v1214_v17  ;;  %1119 = vmatprep.mubr.msk.bf16.mxu0 %vm352_vm2, %v1215_v18 }
  0x2d   : > { %1135 = vmatprep.mubr.msk.bf16.mxu1 %vm352_vm2, %v1216_v19 }
  0x33   : > { %1120 = vmatmul.mubr.msk.bf16.gmra.mrb[12].mxu0 %vm352_vm2, %v1217_v20 }
  0x34   : > { %1136 = vmatmul.mubr.msk.bf16.gmra.mrb[12].mxu1 %vm352_vm2, %v1218_v21 }
  0xee   : > { %v1109_v23 = vpop.f32.mrb[0].mxu0 }
  0xef   : > { %v451_v24 = vadd.f32 %v1109_v23, %v1425_v22  ;;  %v1125_v25 = vpop.f32.mrb[0].mxu1  ;;  %v442_v26 = vpop.f32.mrb[1].mxu0 }
  0xf0   : > { %v515_v27 = vadd.f32 %v1125_v25, %v1425_v22  ;;  %v443_v28 = vadd.f32 %v1425_v22, %v442_v26  ;;  %v506_v29 = vpop.f32.mrb[1].mxu1  ;;  %v1110_v30 = vpop.f32.mrb[2].mxu0 }
  0xf1   : > { %v507_v31 = vadd.f32 %v1425_v22, %v506_v29  ;;  %v454_v32 = vadd.f32 %v1110_v30, %v1425_v22  ;;  %v1126_v33 = vpop.f32.mrb[2].mxu1  ;;  %v445_v34 = vpop.f32.mrb[3].mxu0  ;;  %v571_v38 = vmax.f32 %v451_v24, 0.0 }
  0xf2   : > { %v518_v35 = vadd.f32 %v1126_v33, %v1425_v22  ;;  %v446_v36 = vadd.f32 %v1425_v22, %v445_v34  ;;  %v509_v37 = vpop.f32.mrb[3].mxu1  ;;  %v587_v41 = vmax.f32 %v515_v27, 0.0  ;;  %v569_v42 = vmax.f32 %v443_v28, 0.0 }
  0xf3   : > { %v572_v39 = vmax.f32 %v454_v32, 0.0  ;;  %v510_v40 = vadd.f32 %v1425_v22, %v509_v37  ;;  %v585_v45 = vmax.f32 %v507_v31, 0.0 }
  0xf4   : > { %v588_v43 = vmax.f32 %v518_v35, 0.0  ;;  %v570_v44 = vmax.f32 %v446_v36, 0.0 }
  0xf5   : > { %v998_v46 = vpack.c.bf16 %v572_v39, %v571_v38  ;;  %v586_v47 = vmax.f32 %v510_v40, 0.0 }
  0xf6   : > { %v1038_v48 = vpack.c.bf16 %v588_v43, %v587_v41  ;;  %v993_v49 = vpack.c.bf16 %v570_v44, %v569_v42  ;;  %v1113_v50 = vpop.f32.mrb[4].mxu0 }
  0xf7   : > { %1070 = vst [vmem:[%s1438_s18 + $0x8] sm:$0xff] %v998_v46   ;;  %v1033_v51 = vpack.c.bf16 %v586_v47, %v585_v45  ;;  %v467_v52 = vadd.f32 %v1113_v50, %v1425_v22  ;;  %v1129_v53 = vpop.f32.mrb[4].mxu1  ;;  %v458_v54 = vpop.f32.mrb[5].mxu0 }
  0xf8   : > { %1078 = vst [vmem:[%s1438_s18 + $0x48] sm:$0xff] %v1038_v48   ;;  %994 = vst [vmem:[%s1438_s18] sm:$0xff] %v993_v49   ;;  %v531_v55 = vadd.f32 %v1129_v53, %v1425_v22  ;;  %v459_v56 = vadd.f32 %v1425_v22, %v458_v54  ;;  %v522_v57 = vpop.f32.mrb[5].mxu1  ;;  %v1114_v58 = vpop.f32.mrb[6].mxu0 }
  0xf9   : > { %1077 = vst [vmem:[%s1438_s18 + $0x40] sm:$0xff] %v1033_v51   ;;  %v523_v59 = vadd.f32 %v1425_v22, %v522_v57  ;;  %v470_v60 = vadd.f32 %v1114_v58, %v1425_v22  ;;  %v1130_v61 = vpop.f32.mrb[6].mxu1  ;;  %v461_v62 = vpop.f32.mrb[7].mxu0  ;;  %v575_v2 = vmax.f32 %v467_v52, 0.0 }
  0xfa   : > { %v534_v63 = vadd.f32 %v1130_v61, %v1425_v22  ;;  %v462_v0 = vadd.f32 %v1425_v22, %v461_v62  ;;  %v525_v1 = vpop.f32.mrb[7].mxu1  ;;  %v591_v5 = vmax.f32 %v531_v55, 0.0  ;;  %v573_v6 = vmax.f32 %v459_v56, 0.0 }
  0xfb   : > { %v576_v3 = vmax.f32 %v470_v60, 0.0  ;;  %v526_v4 = vadd.f32 %v1425_v22, %v525_v1  ;;  %v589_v9 = vmax.f32 %v523_v59, 0.0 }
  0xfc   : > { %v592_v7 = vmax.f32 %v534_v63, 0.0  ;;  %v574_v8 = vmax.f32 %v462_v0, 0.0 }
  0xfd   : > { %v1008_v10 = vpack.c.bf16 %v576_v3, %v575_v2  ;;  %v590_v11 = vmax.f32 %v526_v4, 0.0 }
  0xfe   : > { %v1048_v12 = vpack.c.bf16 %v592_v7, %v591_v5  ;;  %v1003_v13 = vpack.c.bf16 %v574_v8, %v573_v6  ;;  %v1117_v14 = vpop.f32.mrb[8].mxu0 }
  0xff   : > { %1072 = vst [vmem:[%s1438_s18 + $0x18] sm:$0xff] %v1008_v10   ;;  %v1043_v15 = vpack.c.bf16 %v590_v11, %v589_v9  ;;  %v483_v16 = vadd.f32 %v1117_v14, %v1425_v22  ;;  %v1133_v17 = vpop.f32.mrb[8].mxu1  ;;  %v474_v18 = vpop.f32.mrb[9].mxu0 }
 0x100   : > { %1080 = vst [vmem:[%s1438_s18 + $0x58] sm:$0xff] %v1048_v12   ;;  %1071 = vst [vmem:[%s1438_s18 + $0x10] sm:$0xff] %v1003_v13   ;;  %v547_v19 = vadd.f32 %v1133_v17, %v1425_v22  ;;  %v475_v20 = vadd.f32 %v1425_v22, %v474_v18  ;;  %v538_v21 = vpop.f32.mrb[9].mxu1  ;;  %v1118_v23 = vpop.f32.mrb[10].mxu0 }
 0x101   : > { %1079 = vst [vmem:[%s1438_s18 + $0x50] sm:$0xff] %v1043_v15   ;;  %v539_v24 = vadd.f32 %v1425_v22, %v538_v21  ;;  %v486_v25 = vadd.f32 %v1118_v23, %v1425_v22  ;;  %v1134_v26 = vpop.f32.mrb[10].mxu1  ;;  %v477_v27 = vpop.f32.mrb[11].mxu0  ;;  %v579_v31 = vmax.f32 %v483_v16, 0.0 }
 0x102   : > { %v550_v28 = vadd.f32 %v1134_v26, %v1425_v22  ;;  %v478_v29 = vadd.f32 %v1425_v22, %v477_v27  ;;  %v541_v30 = vpop.f32.mrb[11].mxu1  ;;  %v595_v34 = vmax.f32 %v547_v19, 0.0  ;;  %v577_v35 = vmax.f32 %v475_v20, 0.0 }
 0x103   : > { %v580_v32 = vmax.f32 %v486_v25, 0.0  ;;  %v542_v33 = vadd.f32 %v1425_v22, %v541_v30  ;;  %v593_v38 = vmax.f32 %v539_v24, 0.0 }
 0x104   : > { %v596_v36 = vmax.f32 %v550_v28, 0.0  ;;  %v578_v37 = vmax.f32 %v478_v29, 0.0 }
 0x105   : > { %v1018_v39 = vpack.c.bf16 %v580_v32, %v579_v31  ;;  %v594_v40 = vmax.f32 %v542_v33, 0.0 }
 0x106   : > { %v1058_v41 = vpack.c.bf16 %v596_v36, %v595_v34  ;;  %v1013_v42 = vpack.c.bf16 %v578_v37, %v577_v35  ;;  %v1121_v43 = vpop.f32.mrb[12].mxu0 }
 0x107   : > { %1074 = vst [vmem:[%s1438_s18 + $0x28] sm:$0xff] %v1018_v39   ;;  %v1053_v44 = vpack.c.bf16 %v594_v40, %v593_v38  ;;  %v499_v45 = vadd.f32 %v1121_v43, %v1425_v22  ;;  %v1137_v46 = vpop.f32.mrb[12].mxu1  ;;  %v490_v47 = vpop.f32.mrb[13].mxu0 }
 0x108   : > { %1082 = vst [vmem:[%s1438_s18 + $0x68] sm:$0xff] %v1058_v41   ;;  %1073 = vst [vmem:[%s1438_s18 + $0x20] sm:$0xff] %v1013_v42   ;;  %v563_v48 = vadd.f32 %v1137_v46, %v1425_v22  ;;  %v491_v49 = vadd.f32 %v1425_v22, %v490_v47  ;;  %v554_v50 = vpop.f32.mrb[13].mxu1  ;;  %v1122_v51 = vpop.f32.mrb[14].mxu0 }
 0x109   : > { %1081 = vst [vmem:[%s1438_s18 + $0x60] sm:$0xff] %v1053_v44   ;;  %v555_v52 = vadd.f32 %v1425_v22, %v554_v50  ;;  %v502_v53 = vadd.f32 %v1122_v51, %v1425_v22  ;;  %v1138_v54 = vpop.f32.mrb[14].mxu1  ;;  %v493_v55 = vpop.f32.mrb[15].mxu0  ;;  %v583_v59 = vmax.f32 %v499_v45, 0.0 }
 0x10a   : > { %v566_v56 = vadd.f32 %v1138_v54, %v1425_v22  ;;  %v494_v57 = vadd.f32 %v1425_v22, %v493_v55  ;;  %v557_v58 = vpop.f32.mrb[15].mxu1  ;;  %v599_v62 = vmax.f32 %v563_v48, 0.0  ;;  %v581_v63 = vmax.f32 %v491_v49, 0.0 }
 0x10b   : > { %v584_v60 = vmax.f32 %v502_v53, 0.0  ;;  %v558_v61 = vadd.f32 %v1425_v22, %v557_v58  ;;  %v597_v2 = vmax.f32 %v555_v52, 0.0 }
 0x10c   : > { %v600_v0 = vmax.f32 %v566_v56, 0.0  ;;  %v582_v1 = vmax.f32 %v494_v57, 0.0 }
 0x10d   : > { %v1028_v3 = vpack.c.bf16 %v584_v60, %v583_v59  ;;  %v598_v4 = vmax.f32 %v558_v61, 0.0 }
 0x10e   : > { %v1068_v5 = vpack.c.bf16 %v600_v0, %v599_v62  ;;  %v1023_v6 = vpack.c.bf16 %v582_v1, %v581_v63 }
 0x10f   : > { %1076 = vst [vmem:[%s1438_s18 + $0x38] sm:$0xff] %v1028_v3   ;;  %v1063_v22 = vpack.c.bf16 %v598_v4, %v597_v2 }
 0x110   : > { %1084 = vst [vmem:[%s1438_s18 + $0x78] sm:$0xff] %v1068_v5   ;;  %1075 = vst [vmem:[%s1438_s18 + $0x30] sm:$0xff] %v1023_v6  }
 0x111   : > { %1083 = vst [vmem:[%s1438_s18 + $0x70] sm:$0xff] %v1063_v22  }
 0x112   : > { %1232 = shalt.err (!%p1229_p5)
}
 0x113   : > { %s1233_s5 = scalar_lea.hbm %s1481_s27, 2048  ;;  %s1237_s8 = scalar_lea.hbm %s1540_s3, 22528 }
 0x114   : > { %p1234_p6 = scmp.ne.s32.totalorder %s1481_s27, %s1233_s5  ;;  %p1238_p10 = scmp.lt.u32.totalorder %s1481_s27, %s1540_s3 }
 0x115   : > { %p1239_p11 = scmp.lt.u32.totalorder %s1237_s8, %s1233_s5  ;;  %p1241_p13 = scmp.lt.u32.totalorder %s1233_s5, %s1481_s27 }
 0x116   : > { %p1235_p7 = pnand %p1234_p6, %p1363_p4 }
 0x117   : > { %p1240_p12 = por %p1239_p11, %p1238_p10 }
 0x118   : > { %p1236_p9 = pneg %p1235_p7 }
 0x119   : > { %p1242_p0 = por %p1241_p13, %p1240_p12 }
 0x11b   : > { %p1243_p1 = pnand %p1242_p0, %p1236_p9 }
 0x11d   : > { %1246 = shalt.err (!%p1243_p1)
}
 0x11e   : > { %s1301_s11 = smov 64   ;;  %s1302_s18 = smov 4  }
 0x11f   : > { %1143 = dma.vmem_to_hbm [thread:$0]  (%p1363_p4), %s1483_s21, 2048, %s1481_s27, %s1491_s15, %s1301_s11, %s1301_s11, %s1302_s18  }
 0x120 PF: > { %p1149_p2 = scmp.ge.s32.totalorder %s1297_s17, 2  ;;  %s791_s19 = sand.u32 1, %s1277_s12  }
 0x121   : > { %s792_s23 = scalar_lea.sflag [#allocation3], %s791_s19 }
 0x122   : > { %p1146_p3 = pnand %p1149_p2, %p1370_p8 }
 0x124   : > { %1272 = dma.done.wait (!%p1146_p3), %s792_s23, 2048  }
 0x125   : > { %1274 = vsyncadd (!%p1146_p3), %s792_s23, 4294965248  ;;  %s16_s17 = sadd.s32 1, %s1297_s17   ;;  %s1543_s12 = smov %s1281_s13 }
 0x126   : > { %p13_p5 = scmp.ge.s32.totalorder %s16_s17, 13   ;;  %s1544_s13 = smov %s1285_s14 }
 0x127   : > { %s1545_s14 = smov %s1376_s25  ;;  %s1546_s15 = smov %s1293_s16 }
 0x128   : > { %s1547_s16 = smov %s1549_s20  ;;  %15 = sbr.rel (!%p13_p5) target bundleno = 4 (0x4), region = 73 }
 0x12f   :  { %797 = vsyncpa [#allocation3], 1 }
 0x130   :  { %799 = vsyncpa [#allocation3 + $0x1], 1 }

</bundles_post_ra>
